<compile_context>
chip_gen: v6e
topology: v6e:2x2x1
jax: 0.10.0
libtpu: 0.0.40
codegen_flags: <defaults>
</compile_context>

<pallas_src>
import math
import functools

import jax
import jax.numpy as jnp
from jax.experimental import pallas as pl
from jax.experimental.pallas import tpu as pltpu


def _round_up(n, m):
    return ((n + m - 1) // m) * m


def _sinusoidal_kernel(table_ref, x_ref, out_ref, *, num_steps, rescale_steps):
    # table_ref: (2, dim) f32 -- row 0: [freqs | freqs], row 1: [0 | pi/2]
    # x_ref:     (TB, 1) f32 timesteps
    # out_ref:   (TB, dim)    [sin(emb) | cos(emb)]
    x = x_ref[...] / num_steps * rescale_steps            # same op order as reference
    freq = table_ref[0:1, :]                              # (1, dim), VMEM-resident
    phase = table_ref[1:2, :]                              # (1, dim)
    emb = x * freq + phase                                 # (TB, dim), lane-dense
    # cos(t) == sin(t + pi/2): one unmasked full-width store instead of two
    # masked half-width stores.
    out_ref[...] = jnp.sin(emb).astype(out_ref.dtype)


def sinusoidal_pos_emb(x, *, num_steps, dim, rescale_steps=4000.0,
                       out_dtype=jnp.float32):
    """JAX/Pallas equivalent of SinusoidalPosEmb.forward.

    Args:
      x: (B,) array of timesteps (any real dtype; cast to float32).
    Returns:
      (B, dim) embedding = concat(sin(emb), cos(emb), axis=-1).
    """
    assert dim % 2 == 0 and dim >= 4, "dim must be even and >= 4"
    x = x.astype(jnp.float32).reshape(-1, 1)              # (B, 1)
    B = x.shape[0]

    # Host-side frequency/phase table (matches the PyTorch construction).
    half_dim = dim // 2
    scale = math.log(10000.0) / (half_dim - 1)
    freqs = jnp.exp(jnp.arange(half_dim, dtype=jnp.float32) * (-scale))
    table = jnp.stack(
        [jnp.concatenate([freqs, freqs]),
         jnp.concatenate([jnp.zeros((half_dim,), jnp.float32),
                          jnp.full((half_dim,), math.pi / 2.0, jnp.float32)])],
        axis=0)                                            # (2, dim)

    # Batch tiling: largest multiple-of-8 row tile whose (TB, dim) f32 output
    # tile stays <= ~4 MiB (double-buffered this fits the default scoped VMEM
    # on v5e/v6e/v7x with large headroom), capped at 1024 rows (per-step
    # overhead is already fully amortized there).
    rows_by_vmem = max(8, ((1 << 20) // dim) // 8 * 8)     # ~4 MiB f32 tile
    TB = min(1024, _round_up(B, 8), rows_by_vmem)
    B_pad = _round_up(B, TB)
    if B_pad != B:
        x = jnp.pad(x, ((0, B_pad - B), (0, 0)))
    grid = (B_pad // TB,)

    kernel = functools.partial(_sinusoidal_kernel,
                               num_steps=float(num_steps),
                               rescale_steps=float(rescale_steps))

    out = pl.pallas_call(
        kernel,
        out_shape=jax.ShapeDtypeStruct((B_pad, dim), out_dtype),
        grid=grid,
        in_specs=[
            pl.BlockSpec((2, dim), lambda i: (0, 0)),      # table, resident
            pl.BlockSpec((TB, 1), lambda i: (i, 0)),       # timesteps tile
        ],
        out_specs=pl.BlockSpec((TB, dim), lambda i: (i, 0)),
        compiler_params=pltpu.CompilerParams(
            dimension_semantics=("parallel",)),            # no reduction axis
        cost_estimate=pl.CostEstimate(
            flops=3 * B_pad * dim,
            transcendentals=B_pad * dim,
            bytes_accessed=(B_pad * dim + B_pad + 2 * dim) * 4),
    )(table, x)

    return out if B_pad == B else out[:B]


def _reference(x, *, num_steps, dim, rescale_steps=4000.0):
    x = x.astype(jnp.float32) / float(num_steps) * float(rescale_steps)
    half_dim = dim // 2
    scale = math.log(10000.0) / (half_dim - 1)
    freqs = jnp.exp(jnp.arange(half_dim, dtype=jnp.float32) * (-scale))
    emb = x[:, None] * freqs[None, :]
    return jnp.concatenate([jnp.sin(emb), jnp.cos(emb)], axis=-1)


if __name__ == "__main__":
    key = jax.random.PRNGKey(0)
    B, dim, num_steps = 8, 128, 100

    # Deterministic "timesteps": integers in [0, num_steps)
    x = jax.random.randint(key, (B,), 0, num_steps).astype(jnp.float32)

    out = sinusoidal_pos_emb(x, num_steps=num_steps, dim=dim,
                             rescale_steps=4000.0)
    out = jax.block_until_ready(out)

    ref = _reference(x, num_steps=num_steps, dim=dim, rescale_steps=4000.0)
    assert out.shape == (B, dim), out.shape
    # sin/cos arguments reach ~4000; f32 ulp there is ~2.4e-4, so two valid
    # implementations (Mosaic vs XLA) can legitimately differ by a few 1e-4.
    assert jnp.allclose(out, ref, atol=5e-3, rtol=1e-3), "mismatch vs reference"

    print("KERNEL_OK")
</pallas_src>

<mosaic_0001>
module attributes {stable_mosaic.version = 11 : i64} {
  func.func @_sinusoidal_kernel(%arg0: i32, %arg1: memref<2x128xf32, #tpu.memory_space<vmem>>, %arg2: memref<8x1xf32, #tpu.memory_space<vmem>>, %arg3: memref<8x128xf32, #tpu.memory_space<vmem>>) attributes {dimension_semantics = [#tpu.dimension_semantics<parallel>], iteration_bounds = array<i64: 1>, scalar_prefetch = 0 : i64, scratch_operands = 0 : i64, tpu.core_type = #tpu.core_type<tc>, window_params = [{pipeline_mode = #tpu.pipeline_mode<synchronous>, transform_indices = @transform_0, window_bounds = array<i64: 2, 128>}, {transform_indices = @transform_1, window_bounds = array<i64: 8, 1>}, {transform_indices = @transform_2, window_bounds = array<i64: 8, 128>}]} {
    %c0 = arith.constant 0 : index
    %c0_0 = arith.constant 0 : index
    %0 = vector.load %arg2[%c0, %c0_0] : memref<8x1xf32, #tpu.memory_space<vmem>>, vector<8x1xf32>
    %cst = arith.constant 1.000000e+02 : f32
    %1 = vector.broadcast %cst : f32 to vector<8x1xf32>
    %2 = arith.divf %0, %1 : vector<8x1xf32>
    %cst_1 = arith.constant 4.000000e+03 : f32
    %3 = vector.broadcast %cst_1 : f32 to vector<8x1xf32>
    %4 = arith.mulf %2, %3 : vector<8x1xf32>
    %c0_2 = arith.constant 0 : index
    %c0_3 = arith.constant 0 : index
    %5 = vector.load %arg1[%c0_2, %c0_3] : memref<2x128xf32, #tpu.memory_space<vmem>>, vector<1x128xf32>
    %c1 = arith.constant 1 : index
    %c0_4 = arith.constant 0 : index
    %6 = vector.load %arg1[%c1, %c0_4] : memref<2x128xf32, #tpu.memory_space<vmem>>, vector<1x128xf32>
    %7 = vector.broadcast %4 : vector<8x1xf32> to vector<8x128xf32>
    %8 = vector.broadcast %5 : vector<1x128xf32> to vector<8x128xf32>
    %9 = arith.mulf %7, %8 : vector<8x128xf32>
    %10 = vector.broadcast %6 : vector<1x128xf32> to vector<8x128xf32>
    %11 = arith.addf %9, %10 : vector<8x128xf32>
    %12 = math.sin %11 : vector<8x128xf32>
    %c0_5 = arith.constant 0 : index
    %c0_6 = arith.constant 0 : index
    %13 = vector.load %arg3[%c0_5, %c0_6] : memref<8x128xf32, #tpu.memory_space<vmem>>, vector<8x128xf32>
    tpu.vector_store %arg3[%c0_5, %c0_6], %12 {strides = array<i32>} : memref<8x128xf32, #tpu.memory_space<vmem>>, vector<8x128xf32>,
    return
  }
  func.func @transform_0(%arg0: i32) -> (i32, i32) {
    %c0_i32 = arith.constant 0 : i32
    %c0_i32_0 = arith.constant 0 : i32
    %c0_i32_1 = arith.constant 0 : i32
    return %c0_i32, %c0_i32_0 : i32, i32
  }
  func.func @transform_1(%arg0: i32) -> (i32, i32) {
    %c0_i32 = arith.constant 0 : i32
    %c0_i32_0 = arith.constant 0 : i32
    return %arg0, %c0_i32 : i32, i32
  }
  func.func @transform_2(%arg0: i32) -> (i32, i32) {
    %c0_i32 = arith.constant 0 : i32
    %c0_i32_0 = arith.constant 0 : i32
    return %arg0, %c0_i32 : i32, i32
  }
}

</mosaic_0001>

<bundles_post_ra>
// kernel: tpu_custom_call.1
= control target key start
LH: loop header
LB: loop body
LE: loop exit
PB: predicated region body
PF: predicated region fallthrough
CT: control target
= control target key end

     0   :  { %v197_v1 = vmov 0   ;;  %s253_s0 = inlined_call_operand.vmem [shape: f32[2,128], index: 0, kind: input, shape index: {}]   ;;  %s254_s1 = inlined_call_operand.vmem [shape: f32[8,1], index: 1, kind: input, shape index: {}]   ;;  %s255_s2 = inlined_call_operand.hbm [shape: f32[8,128], index: 2, kind: output, shape index: {}]  }
   0x1   :  { %v12_v0 = vld [vmem:[%s254_s1] sm:$0xff]  ;;  %170 = vset.pattern.permute.xlu0 %v197_v1 }
   0x2   :  { %v14_v2 = vmul.f32 0.01, %v12_v0 }
   0x3   :  { %7 = vsyncpa [#allocation3], 0  ;;  %v152_v4 = vld [vmem:[%s253_s0] ss:$0 sm:$0xff]  ;;  %v153_v5 = vld [vmem:[%s253_s0 + $0x1] ss:$0 sm:$0xff] }
   0x4   :  { %v15_v3 = vmul.f32 4000.0, %v14_v2  ;;  %v198_v20 = vmov 2102212464   ;;  %v199_v22 = vmov 920167782   ;;  %s204_s0 = smov [#allocation2]  }
   0x5   :  { %v200_v26 = vmov 1326507024   ;;  %v201_v28 = vmov 683565275   ;;  %v202_v30 = vmov 2475754826  }
   0x6   :  { %20 = vperm.xlu0 %170, %v15_v3   ;;  %v203_v33 = vmov 2131351028   ;;  %s144_s1 = sshll.u32 %s204_s0, 4  ;;  %s145_s1 = int_to_ptr.vmem [resolvable:$true] %s144_s1 }
   0x7   :  { %s175_s15 = scalar_lea.vmem %s145_s1, 128  ;;  %p180_p1 = scmp.lt.s32.totalorder %s145_s1, %s145_s1 }
   0x8   :  { %p176_p0 = scmp.ne.s32.totalorder %s145_s1, %s175_s15  ;;  %p181_p2 = scmp.lt.s32.totalorder %s175_s15, %s175_s15 }
   0xa   :  { %p182_p3 = por %p181_p2, %p180_p1 }
   0xc   :  { %p183_p4 = pnand %p182_p3, %p176_p0 }
  0x81   :  { %v21_v6 = vpop.permute.xlu0 %20 }
  0x82   :  { %v27_v7 = vmul.f32 %v152_v4, %v21_v6 }
  0x84   :  { %v229_v8 = vadd.f32 %v153_v5, %v27_v7 }
  0x86   :  { %v36_v9 = vand.u32 2139095040, %v229_v8  ;;  %v33_v10 = vand.u32 2147483647, %v229_v8  ;;  %vm35_vm7 = vcmp.lt.s32.totalorder %v229_v8, 0  ;;  %vm125_vm12 = vweird.f32 %v229_v8 }
  0x88   :  { %v37_v11 = vshrl.u32 %v36_v9, 23  ;;  %v40_v13 = vand.u32 8388607, %v33_v10  ;;  %vm34_vm8 = vcmp.le.f32.partialorder %v33_v10, 0.7853982 }
  0x8a   :  { %v154_v12 = vadd.s32 4294967169, %v37_v11  ;;  %v41_v16 = vor.u32 8388608, %v40_v13 }
  0x8c   :  { %v43_v14 = vadd.s32 1, %v154_v12  ;;  %v81_v24 = vshll.u32 %v41_v16, 8 }
  0x8e   :  { %vm44_vm0 = vcmp.gt.s32.totalorder %v43_v14, 0 }
  0x8f   :  { %v45_v15 = vsel %vm44_vm0, %v43_v14, 0 }
  0x90   :  { %v47_v17 = vand.u32 31, %v45_v15  ;;  %v46_v18 = vshrl.u32 %v45_v15, 5 }
  0x92   :  { %v48_v19 = vsub.s32 32, %v47_v17  ;;  %v59_v21 = vshll.u32 %v198_v20, %v47_v17  ;;  %v62_v23 = vshll.u32 %v199_v22, %v47_v17  ;;  %v50_v29 = vshll.u32 %v201_v28, %v47_v17 }
  0x93   :  { %v53_v32 = vshll.u32 %v202_v30, %v47_v17  ;;  %v56_v35 = vshll.u32 %v203_v33, %v47_v17  ;;  %vm68_vm1 = vcmp.lt.s32.totalorder %v46_v18, 4  ;;  %vm65_vm2 = vcmp.lt.s32.totalorder %v46_v18, 1 }
  0x94   :  { %v60_v25 = vshrl.u32 %v199_v22, %v48_v19  ;;  %v63_v27 = vshrl.u32 %v200_v26, %v48_v19  ;;  %v51_v31 = vshrl.u32 %v202_v30, %v48_v19  ;;  %v54_v34 = vshrl.u32 %v203_v33, %v48_v19 }
  0x95   :  { %v57_v36 = vshrl.u32 %v198_v20, %v48_v19  ;;  %v49_v40 = vshrl.u32 %v201_v28, %v48_v19  ;;  %vm66_vm3 = vcmp.lt.s32.totalorder %v46_v18, 2  ;;  %vm67_vm4 = vcmp.lt.s32.totalorder %v46_v18, 3 }
  0x96   :  { %v61_v37 = vor.u32 %v60_v25, %v59_v21  ;;  %v64_v38 = vor.u32 %v63_v27, %v62_v23  ;;  %v52_v39 = vor.u32 %v51_v31, %v50_v29  ;;  %v55_v41 = vor.u32 %v54_v34, %v53_v32 }
  0x97   :  { %v58_v42 = vor.u32 %v57_v36, %v56_v35 }
  0x98   :  { %v74_v43 = vsel %vm68_vm1, %v61_v37, 920167782  ;;  %v78_v44 = vsel %vm68_vm1, %v64_v38, 1326507024  ;;  %v73_v46 = vsel %vm65_vm2, %v52_v39, %v55_v41  ;;  %v69_v49 = vsel %vm65_vm2, %v49_v40, %v52_v39 }
  0x99   :  { %v70_v45 = vsel %vm68_vm1, %v58_v42, 2102212464  ;;  %v75_v47 = vsel %vm67_vm4, %v58_v42, %v74_v43  ;;  %v77_v48 = vsel %vm65_vm2, %v55_v41, %v58_v42  ;;  %v79_v52 = vsel %vm67_vm4, %v61_v37, %v78_v44 }
  0x9a   :  { %v71_v50 = vsel %vm67_vm4, %v55_v41, %v70_v45  ;;  %v76_v51 = vsel %vm66_vm3, %v73_v46, %v75_v47  ;;  %v80_v53 = vsel %vm66_vm3, %v77_v48, %v79_v52 }
  0x9b   :  { %v235_v54 = vmul.u32.u64.low %v81_v24, %v76_v51  ;;  %v236_v55 = vmul.u32.u64.high %v81_v24, %v76_v51, %v235_v54  ;;  %v238_v56 = vmul.u32.u64.low %v81_v24, %v80_v53  ;;  %v239_v57 = vmul.u32.u64.high %v81_v24, %v80_v53, %v238_v56 }
  0x9c   :  { %v72_v58 = vsel %vm66_vm3, %v69_v49, %v71_v50 }
  0x9d   :  { %v91_v59 = vadd.s32 1, %v236_v55  ;;  %v88_v60 = vmul.u32 %v81_v24, %v72_v58  ;;  %vm90_vm5 = vc.u32 %v239_v57, %v235_v54  ;;  %v89_v9 = vadd.s32 %v235_v54, %v239_v57 }
  0x9f   :  { %v92_v61 = vsel %vm90_vm5, %v91_v59, %v236_v55 }
  0xa0   :  { %v93_v62 = vadd.s32 %v92_v61, %v88_v60 }
  0xa2   :  { %v94_v63 = vadd.s32 536870912, %v93_v62 }
  0xa4   :  { %v95_v0 = vshrl.u32 %v94_v63, 30 }
  0xa6   :  { %v96_v1 = vshll.u32 %v95_v0, 30  ;;  %v119_v23 = vsub.s32 4, %v95_v0 }
  0xa8   :  { %v97_v2 = vsub.s32 %v93_v62, %v96_v1  ;;  %v120_v26 = vsel %vm35_vm7, %v119_v23, %v95_v0 }
  0xa9   :  { %v122_v27 = vsel %vm34_vm8, 0, %v120_v26 }
  0xaa   :  { %v99_v3 = vsub.s32 0, %v97_v2  ;;  %v126_v28 = vadd.s32 3, %v122_v27 }
  0xac   :  { %v155_v4 = vmin.u32 %v99_v3, %v97_v2  ;;  %v127_v29 = vand.u32 3, %v126_v28 }
  0xae   :  { %v101_v5 = vclz %v155_v4  ;;  %vm132_vm9 = vcmp.eq.s32.totalorder %v127_v29, 2  ;;  %vm129_vm10 = vcmp.eq.s32.totalorder %v127_v29, 0  ;;  %vm128_vm11 = vcmp.lt.s32.totalorder %v127_v29, 2 }
  0xb0   :  { %v156_v6 = vadd.s32 4294967294, %v101_v5 }
  0xb2   :  { %vm157_vm6 = vcmp.lt.s32.totalorder %v156_v6, 0 }
  0xb3   :  { %v104_v7 = vsel %vm157_vm6, 0, %v156_v6 }
  0xb4   :  { %v105_v11 = vsub.s32 32, %v104_v7  ;;  %v109_v12 = vsub.s32 4294967266, %v104_v7  ;;  %v106_v13 = vshll.u32 %v97_v2, %v104_v7 }
  0xb6   :  { %v107_v14 = vshrl.u32 %v89_v9, %v105_v11  ;;  %v110_v15 = vadd.s32 127, %v109_v12 }
  0xb8   :  { %v108_v16 = vor.u32 %v107_v14, %v106_v13  ;;  %v111_v17 = vshll.u32 %v110_v15, 23 }
  0xba   :  { %v112_v18 = vor.u32 4788187, %v111_v17  ;;  %v115_v20 = vcvt.s32.f32 %v108_v16 }
  0xbc   :  { %v113_v19 = vand.u32 2147483647, %v112_v18 }
  0xbe   :  { %v116_v21 = vmul.f32 %v115_v20, %v113_v19 }
  0xc0   :  { %v117_v22 = vxor.u32 2147483648, %v116_v21 }
  0xc2   :  { %v118_v24 = vsel %vm35_vm7, %v117_v22, %v116_v21 }
  0xc3   :  { %v121_v25 = vsel %vm34_vm8, %v229_v8, %v118_v24 }
  0xc4   :  { %171 = vcosq.f32 %v121_v25 }
  0xc5   :  { %173 = vsinq.f32 %v121_v25 }
  0xd1   :  { %v172_v30 = vpop.eup %171 }
  0xd2   :  { %v174_v31 = vpop.eup %173  ;;  %v133_v32 = vxor.u32 2147483648, %v172_v30 }
  0xd3   :  { %v130_v33 = vxor.u32 2147483648, %v174_v31 }
  0xd4   :  { %v134_v34 = vsel %vm132_vm9, %v133_v32, %v174_v31 }
  0xd5   :  { %v131_v10 = vsel %vm129_vm10, %v172_v30, %v130_v33 }
  0xd6   :  { %v135_v35 = vsel %vm128_vm11, %v131_v10, %v134_v34 }
  0xd7   :  { %v136_v36 = vsel %vm125_vm12, nan, %v135_v35 }
  0xd8   :  { %137 = vst [vmem:[#allocation2] sm:$0xff] %v136_v36 }
  0xd9   :  { %186 = shalt.err (!%p183_p4)
}
  0xda   :  { %147 = dma.vmem_to_hbm [thread:$0]  %s145_s1, 128, %s255_s2, [#allocation3]  }
  0xdb   :  { %195 = dma.done.wait [#allocation3], 128  }
  0xdc   :  { %196 = vsyncadd [#allocation3], 4294967168 }
  0xdd   :  { %151 = vsyncpa [#allocation3], 1 }

</bundles_post_ra>
